<compile_context>
chip_gen: v6e
topology: v6e:2x2x1
jax: 0.10.0
libtpu: 0.0.40
codegen_flags: <defaults>
</compile_context>

<pallas_src>
import jax
import jax.numpy as jnp
from jax.experimental import pallas as pl
from jax.experimental.pallas import tpu as pltpu


def _round_up(x: int, m: int) -> int:
    return ((x + m - 1) // m) * m


def _cdiv(a: int, b: int) -> int:
    return (a + b - 1) // b


def _mm_kernel_out_acc(a_ref, b_ref, o_ref):
    # f32 output: the output block index ignores k, so the block stays resident
    # in VMEM across the whole K axis -> accumulate into it directly.
    @pl.when(pl.program_id(2) == 0)
    def _():
        o_ref[...] = jnp.zeros_like(o_ref)

    o_ref[...] += jnp.dot(
        a_ref[...], b_ref[...], preferred_element_type=jnp.float32
    )


def _mm_kernel_scratch_acc(a_ref, b_ref, o_ref, acc_ref):
    # Narrow output dtypes: f32 scratch accumulator, single cast/store at the end.
    @pl.when(pl.program_id(2) == 0)
    def _():
        acc_ref[...] = jnp.zeros_like(acc_ref)

    acc_ref[...] += jnp.dot(
        a_ref[...], b_ref[...], preferred_element_type=jnp.float32
    )

    @pl.when(pl.program_id(2) == pl.num_programs(2) - 1)
    def _():
        o_ref[...] = acc_ref[...].astype(o_ref.dtype)


def _tpu_info():
    """(physical VMEM bytes, lowercase device_kind) with conservative fallbacks."""
    vmem = 64 << 20  # v7x per-TensorCore (the smallest of the supported chips)
    try:
        info = pltpu.get_tpu_info()
        vmem = int(getattr(info, "vmem_capacity_bytes", vmem))
    except Exception:
        pass
    kind = ""
    try:
        kind = jax.devices()[0].device_kind.lower()
    except Exception:
        pass
    return vmem, kind


def pallas_mm(a: jax.Array, b: jax.Array) -> jax.Array:
    """Equivalent of torch.mm(a, b) as a Pallas TPU kernel."""
    M, K = a.shape
    K2, N = b.shape
    assert K == K2, f"inner dims mismatch: {K} vs {K2}"

    out_dtype = jnp.promote_types(a.dtype, b.dtype)
    # The MXU has no integer / f64 matmul path; compute those in f32 and cast back.
    # TODO(synk): exact integer torch.mm semantics are not representable on the MXU.
    is_native_float = (
        jnp.issubdtype(out_dtype, jnp.floating) and jnp.dtype(out_dtype).itemsize <= 4
    )
    compute_dtype = out_dtype if is_native_float else jnp.float32
    kernel_out_dtype = out_dtype if is_native_float else jnp.float32
    if a.dtype != compute_dtype:
        a = a.astype(compute_dtype)
    if b.dtype != compute_dtype:
        b = b.astype(compute_dtype)

    in_bytes = jnp.dtype(compute_dtype).itemsize
    out_bytes = jnp.dtype(kernel_out_dtype).itemsize
    phys_vmem, kind = _tpu_info()
    is_v5_class = "v5" in kind  # v5e/v5p: 128x128 MXUs, much lower roofline crossover

    # ---- Target tiles (arithmetic intensity ~ 2 / (itemsize*(1/tm + 1/tn))) ----
    if is_v5_class:
        if in_bytes <= 2:
            tgt_tm, tgt_tn, tgt_tk = 512, 512, 1024
        else:
            tgt_tm, tgt_tn, tgt_tk = 512, 512, 512
    else:  # v6e / v7x (and unknown chips): favor big M/N tiles, modest K
        if in_bytes <= 2:
            tgt_tm, tgt_tn, tgt_tk = 512, 2048, 512
        else:
            tgt_tm, tgt_tn, tgt_tk = 512, 1024, 512

    # Clamp for small problems; keep native packed-sublane / lane alignment.
    sub = {1: 32, 2: 16}.get(in_bytes, 8)
    tm = min(tgt_tm, _round_up(M, sub))
    tn = min(tgt_tn, _round_up(N, 128))
    tk = min(tgt_tk, _round_up(K, 128))

    # Give v7x's two TensorCores something to shard: ensure >= 2 blocks across the
    # parallel (M, N) axes when the problem allows it (harmless on 1-TC chips).
    if _cdiv(M, tm) * _cdiv(N, tn) < 2:
        if N > 128:
            tn = max(128, _round_up(_cdiv(N, 2), 128))
        elif M > sub:
            tm = max(sub, _round_up(_cdiv(M, 2), sub))

    # Only K must be zero-padded (garbage in the K tail would corrupt valid output);
    # ragged M/N edges are handled by partial blocks whose garbage is never written.
    Kp = _round_up(K, tk)
    if Kp != K:
        a = jnp.pad(a, ((0, 0), (0, Kp - K)))
        b = jnp.pad(b, ((0, Kp - K), (0, 0)))

    acc_in_out = jnp.dtype(kernel_out_dtype) == jnp.dtype(jnp.float32)
    kernel = _mm_kernel_out_acc if acc_in_out else _mm_kernel_scratch_acc
    scratch_shapes = [] if acc_in_out else [pltpu.VMEM((tm, tn), jnp.float32)]

    # Double-buffered inputs + (optional) f32 accumulator + double-buffered output.
    footprint = 2 * (tm * tk + tk * tn) * in_bytes + 2 * tm * tn * out_bytes
    if not acc_in_out:
        footprint += tm * tn * 4
    vmem_limit = max(int(footprint * 1.5) + (4 << 20), 32 << 20)
    vmem_limit = min(vmem_limit, (phys_vmem * 3) // 4)  # 48 MiB cap on v7x

    grid_m, grid_n, grid_k = _cdiv(M, tm), _cdiv(N, tn), Kp // tk

    # Honest traffic estimate: A is re-read once per N-tile, B once per M-tile.
    cost = pl.CostEstimate(
        flops=2 * M * N * K,
        transcendentals=0,
        bytes_accessed=(
            M * K * in_bytes * grid_n + K * N * in_bytes * grid_m + M * N * out_bytes
        ),
    )

    out = pl.pallas_call(
        kernel,
        out_shape=jax.ShapeDtypeStruct((M, N), kernel_out_dtype),
        grid_spec=pltpu.PrefetchScalarGridSpec(
            num_scalar_prefetch=0,
            grid=(grid_m, grid_n, grid_k),
            in_specs=[
                pl.BlockSpec((tm, tk), lambda i, j, k: (i, k)),
                pl.BlockSpec((tk, tn), lambda i, j, k: (k, j)),
            ],
            out_specs=pl.BlockSpec((tm, tn), lambda i, j, k: (i, j)),
            scratch_shapes=scratch_shapes,
        ),
        compiler_params=pltpu.CompilerParams(
            dimension_semantics=("parallel", "parallel", "arbitrary"),
            vmem_limit_bytes=vmem_limit,
        ),
        cost_estimate=cost,
    )(a, b)

    if out.dtype != out_dtype:
        out = out.astype(out_dtype)
    return out


if __name__ == "__main__":
    key = jax.random.PRNGKey(0)
    k1, k2, k3, k4 = jax.random.split(key, 4)

    # Small shapes consistent with torch.mm: input1 [M, K], input2 [K, N].
    M, K, N = 32, 64, 128
    input1 = jax.random.normal(k1, (M, K), dtype=jnp.float32)
    input2 = jax.random.normal(k2, (K, N), dtype=jnp.float32)

    out = pallas_mm(input1, input2)
    jax.block_until_ready(out)

    ref = jnp.dot(input1, input2, precision=jax.lax.Precision.HIGHEST)
    assert out.shape == (M, N)
    assert jnp.allclose(out, ref, atol=1e-3, rtol=1e-3), "mismatch vs reference"

    # A ragged shape exercising the no-pad M/N path (partial edge blocks) + K pad.
    M2, K2_, N2 = 200, 260, 300
    a2 = jax.random.normal(k3, (M2, K2_), dtype=jnp.float32)
    b2 = jax.random.normal(k4, (K2_, N2), dtype=jnp.float32)
    out2 = pallas_mm(a2, b2)
    jax.block_until_ready(out2)
    ref2 = jnp.dot(a2, b2, precision=jax.lax.Precision.HIGHEST)
    assert out2.shape == (M2, N2)
    assert jnp.allclose(out2, ref2, atol=2e-3, rtol=2e-3), "mismatch vs reference (ragged)"

    # bf16 path (scratch-accumulator kernel, larger tn target).
    a3 = input1.astype(jnp.bfloat16)
    b3 = input2.astype(jnp.bfloat16)
    out3 = pallas_mm(a3, b3)
    jax.block_until_ready(out3)
    ref3 = jnp.dot(a3.astype(jnp.float32), b3.astype(jnp.float32)).astype(jnp.bfloat16)
    assert out3.shape == (M, N)
    assert jnp.allclose(
        out3.astype(jnp.float32), ref3.astype(jnp.float32), atol=5e-2, rtol=5e-2
    ), "mismatch vs reference (bf16)"

    print("KERNEL_OK")
</pallas_src>

<mosaic_0001>
module attributes {stable_mosaic.version = 11 : i64} {
  func.func @_mm_kernel_out_acc(%arg0: i32, %arg1: i32, %arg2: i32, %arg3: memref<16x128xf32, #tpu.memory_space<vmem>>, %arg4: memref<128x128xf32, #tpu.memory_space<vmem>>, %arg5: memref<16x128xf32, #tpu.memory_space<vmem>>) attributes {dimension_semantics = [#tpu.dimension_semantics<parallel>, #tpu.dimension_semantics<parallel>, #tpu.dimension_semantics<arbitrary>], iteration_bounds = array<i64: 2, 1, 1>, scalar_prefetch = 0 : i64, scratch_operands = 0 : i64, tpu.core_type = #tpu.core_type<tc>, window_params = [{transform_indices = @transform_0, window_bounds = array<i64: 16, 128>}, {transform_indices = @transform_1, window_bounds = array<i64: 128, 128>}, {transform_indices = @transform_2, window_bounds = array<i64: 16, 128>}]} {
    %c0_i32 = arith.constant 0 : i32
    %0 = arith.cmpi eq, %arg2, %c0_i32 : i32
    %1 = arith.extui %0 : i1 to i32
    %c0_i32_0 = arith.constant 0 : i32
    %2 = arith.cmpi ne, %1, %c0_i32_0 : i32
    scf.if %2 {
      %cst_8 = arith.constant 0.000000e+00 : f32
      %9 = vector.broadcast %cst_8 : f32 to vector<16x128xf32>
      %c0_9 = arith.constant 0 : index
      %c0_10 = arith.constant 0 : index
      %10 = vector.load %arg5[%c0_9, %c0_10] : memref<16x128xf32, #tpu.memory_space<vmem>>, vector<16x128xf32>
      tpu.vector_store %arg5[%c0_9, %c0_10], %9 {strides = array<i32>} : memref<16x128xf32, #tpu.memory_space<vmem>>, vector<16x128xf32>,
    } else {
    }
    %c0 = arith.constant 0 : index
    %c0_1 = arith.constant 0 : index
    %3 = vector.load %arg5[%c0, %c0_1] : memref<16x128xf32, #tpu.memory_space<vmem>>, vector<16x128xf32>
    %c0_2 = arith.constant 0 : index
    %c0_3 = arith.constant 0 : index
    %4 = vector.load %arg3[%c0_2, %c0_3] : memref<16x128xf32, #tpu.memory_space<vmem>>, vector<16x128xf32>
    %c0_4 = arith.constant 0 : index
    %c0_5 = arith.constant 0 : index
    %5 = vector.load %arg4[%c0_4, %c0_5] : memref<128x128xf32, #tpu.memory_space<vmem>>, vector<128x128xf32>
    %cst = arith.constant dense<0.000000e+00> : vector<16x128xf32>
    %6 = tpu.matmul %4, %5, %cst {dimension_numbers = #tpu.dot_dimension_numbers<[1], [0], [0], [1], [0, 0, 1, 1], [], []>} : vector<16x128xf32>, vector<128x128xf32>, vector<16x128xf32> -> vector<16x128xf32>
    %7 = arith.addf %3, %6 : vector<16x128xf32>
    %c0_6 = arith.constant 0 : index
    %c0_7 = arith.constant 0 : index
    %8 = vector.load %arg5[%c0_6, %c0_7] : memref<16x128xf32, #tpu.memory_space<vmem>>, vector<16x128xf32>
    tpu.vector_store %arg5[%c0_6, %c0_7], %7 {strides = array<i32>} : memref<16x128xf32, #tpu.memory_space<vmem>>, vector<16x128xf32>,
    return
  }
  func.func @transform_0(%arg0: i32, %arg1: i32, %arg2: i32) -> (i32, i32) {
    %c0_i32 = arith.constant 0 : i32
    return %arg0, %arg2 : i32, i32
  }
  func.func @transform_1(%arg0: i32, %arg1: i32, %arg2: i32) -> (i32, i32) {
    %c0_i32 = arith.constant 0 : i32
    return %arg2, %arg1 : i32, i32
  }
  func.func @transform_2(%arg0: i32, %arg1: i32, %arg2: i32) -> (i32, i32) {
    %c0_i32 = arith.constant 0 : i32
    return %arg0, %arg1 : i32, i32
  }
}

</mosaic_0001>

<bundles_post_ra>
// kernel: tpu_custom_call.1
= control target key start
LH: loop header
LB: loop body
LE: loop exit
PB: predicated region body
PF: predicated region fallthrough
CT: control target
= control target key end

     0   :  { %7 = vsyncpa [#allocation3], 0  ;;  %s944_s0 = inlined_call_operand.hbm [shape: f32[32,128], index: 0, kind: input, shape index: {}]   ;;  %s945_s1 = inlined_call_operand.hbm [shape: f32[128,128], index: 1, kind: input, shape index: {}]   ;;  %s946_s2 = inlined_call_operand.hbm [shape: f32[32,128], index: 2, kind: output, shape index: {}]  }
   0x1   :  { %9 = vsyncpa [#allocation3 + $0x1], 0 }
   0x2   :  { %10 = vsyncpa [#allocation6], 0 }
   0x3   :  { %11 = vsyncpa [#allocation4], 0 }
   0x4   :  { %13 = vsyncpa [#allocation4 + $0x1], 0  ;;  %s749_s9 = smov 0   ;;  %s751_s10 = smov 0  }
   0x5   :  { %s753_s11 = smov 0   ;;  %s755_s12 = smov 0  }
   0x6   :  { %s757_s13 = smov 0   ;;  %s759_s14 = smov 0  }
   0x7 LB: > { %s437_s15 = sadd.s32 4294967295, %s725_s14   ;;  %s438_s16 = sadd.s32 4294967294, %s725_s14   ;;  %s725_s14 = sphi %s759_s14, %s19_s14   ;;  %s721_s13 = sphi %s757_s13, %s966_s13   ;;  %s717_s12 = sphi %s755_s12, %s965_s12   ;;  %s713_s11 = sphi %s753_s11, %s964_s11   ;;  %s709_s10 = sphi %s751_s10, %s963_s10   ;;  %s705_s9 = sphi %s749_s9, %s962_s9  }
   0x8   : > { %p60_p0 = scmp.ne.s32.totalorder %s709_s10, %s705_s9  ;;  %p783_p1 = scmp.eq.s32.totalorder %s437_s15, 0 }
   0x9   : > { %p787_p2 = scmp.eq.s32.totalorder %s437_s15, 1  ;;  %p120_p3 = scmp.eq.s32.totalorder %s438_s16, 1 }
   0xa   : > { %p793_p4 = por %p783_p1, %p60_p0  ;;  %p439_p5 = scmp.ge.s32.totalorder %s725_s14, 1 }
   0xb   : > { %p798_p6 = por %p120_p3, %p60_p0  ;;  %p127_p7 = scmp.lt.s32.totalorder %s725_s14, 3 }
   0xc   : > { %s951_s19 = scalar_select %p793_p4, 1, 0 }
   0xd   : > { %s952_s20 = scalar_select %p798_p6, 1, 0 }
   0xe   : > { %p803_p8 = pnand %p439_p5, %p127_p7  ;;  %s727_s22 = smov [#allocation5]  }
   0xf   : > { %s143_s23 = sshll.u32 %s727_s22, 4  ;;  %s38_s25 = sadd.s32 1, %s721_s13  ;;  %s144_s23 = int_to_ptr.vmem [resolvable:$true] %s143_s23 }
  0x10   : > { %p517_p9 = pneg %p803_p8  ;;  %s598_s26 = scalar_lea.vmem %s144_s23, 2048 }
  0x11   : > { %p599_p13 = scmp.ne.s32.totalorder %s144_s23, %s598_s26  ;;  %p606_p5 = scmp.lt.s32.totalorder %s144_s23, %s144_s23 }
  0x12   : > { %p812_p11 = pnand %p517_p9, %p783_p1  ;;  %p607_p7 = scmp.lt.s32.totalorder %s598_s26, %s598_s26 }
  0x14   : > { %p589_p12 = pneg %p812_p11  ;;  %p608_p6 = por %p607_p7, %p606_p5 }
  0x16   : > { %p601_p0 = pnand %p599_p13, %p589_p12 }
  0x18   : > { %p602_p3 = pneg %p601_p0 }
  0x1a   : > { %p609_p4 = pnand %p608_p6, %p602_p3 }
  0x1c   : > { %612 = shalt.err (!%p609_p4)
}
  0x1d   : > { %s948_s27 = smov 128   ;;  %s729_s28 = smov 8  }
  0x1e   : > { %520 = dma.hbm_to_vmem [thread:$0]  (!%p812_p11), %s945_s1, 2048, %s144_s23, [#allocation6], %s948_s27, %s948_s27, %s729_s28  }
  0x1f   : > { %p40_p4 = scmp.ge.s32.totalorder %s38_s25, 2  ;;  %s47_s3 = sadd.s32 1, %s713_s11 }
  0x20   : > { %p54_p6 = scmp.ne.s32.totalorder %s713_s11, %s709_s10  ;;  %p55_p9 = scmp.eq.s32.totalorder %s725_s14, 0 }
  0x21   : > { %s968_s25 = smov (%p40_p4, %s38_s25), 0  ;;  %p530_p0 = scmp.lt.s32.totalorder %s725_s14, 2 }
  0x22   : > { %p833_p12 = por %p55_p9, %p54_p6  ;;  %p839_p13 = por %p787_p2, %p54_p6 }
  0x23   : > { %s42_s6 = ssub.s32 %s721_s13, %s968_s25  ;;  %s157_s7 = sand.u32 1, %s713_s11  }
  0x24   : > { %p45_p11 = scmp.eq.s32.totalorder %s42_s6, 0  ;;  %s442_s8 = sshll.u32 %s157_s7, 4 }
  0x25   : > { %s454_s16 = sshll.u32 %s721_s13, 8  ;;  %s161_s26 = scalar_lea.vmem [#allocation2], %s442_s8 }
  0x26   : > { %s848_s15 = scalar_select %p45_p11, %s713_s11, %s47_s3  }
  0x27   : > { %s168_s24 = scalar_lea.hbm %s944_s0, %s454_s16  ;;  %s169_s29 = sshll.u32 %s161_s26, 4  ;;  %s170_s29 = int_to_ptr.vmem [resolvable:$true] %s169_s29 }
  0x28   : > { %p856_p2 = pnand %p530_p0, %p833_p12  ;;  %s158_s30 = scalar_lea.sflag [#allocation3], %s157_s7 }
  0x29   : > { %s626_s6 = scalar_lea.vmem %s170_s29, 256  ;;  %s730_s3 = smov [#allocation2]  }
  0x2a   : > { %p615_p3 = pneg %p856_p2  ;;  %p627_p5 = scmp.ne.s32.totalorder %s170_s29, %s626_s6 }
  0x2b   : > { %s631_s27 = sshll.u32 %s730_s3, 4  ;;  %s632_s27 = int_to_ptr.vmem [resolvable:$false] %s631_s27 }
  0x2c   : > { %p629_p7 = pnand %p627_p5, %p615_p3  ;;  %s633_s16 = scalar_lea.vmem %s632_s27, 512 }
  0x2d   : > { %p634_p6 = scmp.lt.s32.totalorder %s170_s29, %s632_s27  ;;  %p635_p9 = scmp.lt.s32.totalorder %s633_s16, %s626_s6 }
  0x2e   : > { %p630_p4 = pneg %p629_p7 }
  0x2f   : > { %p636_p11 = por %p635_p9, %p634_p6 }
  0x31   : > { %p637_p10 = pnand %p636_p11, %p630_p4 }
  0x33   : > { %640 = shalt.err (!%p637_p10)
}
  0x34   : > { %s958_s4 = smov 128   ;;  %181 = sbr.rel (%p803_p8) target bundleno = 302 (0x12e), region = 28 }
  0x35   : > { %524 = dma.hbm_to_vmem [thread:$0]  (!%p856_p2), %s168_s24, 256, %s170_s29, %s158_s30, %s958_s4, %s958_s4, %s729_s28  }
  0x36   : > { %s870_s7 = sand.u32 (!%p803_p8), 1, %s709_s10   ;;  %p959_p10 = scmp.ne.s32.totalorder (!%p803_p8), %s951_s19, 0 }
  0x37   : > { %s446_s27 = sshll.u32 (!%p803_p8), %s870_s7, 4  ;;  %s184_s8 = scalar_lea.sflag (!%p803_p8), [#allocation3], %s870_s7 }
  0x38   : > { %s876_s22 = scalar_lea.vmem (!%p803_p8), [#allocation2], %s446_s27 }
  0x39   : > { %692 = dma.done.wait (%p959_p10), %s184_s8, 256  }
  0x3a   : > { %694 = vsyncadd (%p959_p10), %s184_s8, 4294967040 }
  0x3b   : > { %696 = dma.done.wait (%p783_p1), [#allocation6], 2048  }
  0x3c   : > { %698 = vsyncadd (%p783_p1), [#allocation6], 4294965248  ;;  %v240_v0 = vld [vmem:[#allocation5 + $0x78] sm:$0xff]  ;;  %v239_v1 = vld [vmem:[#allocation5 + $0x70] sm:$0xff]  ;;  %s455_s17 = sshll.u32 %s717_s12, 8  ;;  %s211_s19 = scalar_lea.vmem [#allocation7], %s446_s27 }
  0x3d   : > { %474 = vmatprep.subr.mxu0 %v240_v0  ;;  %v238_v2 = vld [vmem:[#allocation5 + $0x68] sm:$0xff]  ;;  %v237_v3 = vld [vmem:[#allocation5 + $0x60] sm:$0xff]  ;;  %v236_v5 = vld [vmem:[#allocation5 + $0x58] sm:$0xff]  ;;  %s335_s21 = sshll.u32 %s211_s19, 4  ;;  %s894_s24 = scalar_lea.hbm %s946_s2, %s455_s17  ;;  %s896_s21 = int_to_ptr.vmem [resolvable:$true] %s335_s21 }
  0x3e   : > { %475 = vmatpush3.msra.mxu0 %v240_v0  ;;  %v223_v4 = vld [vmem:[%s876_s22] sm:$0xff]  ;;  %v234_v7 = vld [vmem:[#allocation5 + $0x48] sm:$0xff]  ;;  %v232_v9 = vld [vmem:[#allocation5 + $0x38] sm:$0xff]  ;;  %s321_s26 = scalar_lea.sflag [#allocation4], %s870_s7  ;;  %s641_s29 = scalar_lea.vmem %s896_s21, 256 }
  0x3f   : > { %476 = vmatprep.subr.mxu0 %v239_v1  ;;  %506 = vmatprep.mubr.f32.mxu0 %v223_v4  ;;  %v235_v6 = vld [vmem:[#allocation5 + $0x50] sm:$0xff]  ;;  %v233_v8 = vld [vmem:[#allocation5 + $0x40] sm:$0xff]  ;;  %v230_v11 = vld [vmem:[#allocation5 + $0x28] sm:$0xff]  ;;  %p642_p1 = scmp.ne.s32.totalorder %s896_s21, %s641_s29  ;;  %s731_s12 = smov [#allocation7]  }
  0x40   : > { %477 = vmatpush3.msra.mxu0 %v239_v1  ;;  %v231_v10 = vld [vmem:[#allocation5 + $0x30] sm:$0xff]  ;;  %v229_v12 = vld [vmem:[#allocation5 + $0x20] sm:$0xff]  ;;  %v228_v13 = vld [vmem:[#allocation5 + $0x18] sm:$0xff]  ;;  %s645_s18 = sshll.u32 %s731_s12, 4  ;;  %s646_s18 = int_to_ptr.vmem [resolvable:$false] %s645_s18 }
  0x41   : > { %478 = vmatprep.subr.mxu0 %v238_v2  ;;  %v227_v14 = vld [vmem:[#allocation5 + $0x10] sm:$0xff]  ;;  %v226_v15 = vld [vmem:[#allocation5 + $0x8] sm:$0xff]  ;;  %v225_v16 = vld [vmem:[#allocation5] sm:$0xff]  ;;  %p643_p8 = pnand %p642_p1, %p839_p13  ;;  %s647_s30 = scalar_lea.vmem %s646_s18, 512 }
  0x42   : > { %479 = vmatpush3.msra.mxu0 %v238_v2  ;;  %v224_v17 = vld [vmem:[%s876_s22 + $0x8] sm:$0xff]  ;;  %p648_p0 = scmp.lt.s32.totalorder %s896_s21, %s646_s18  ;;  %p649_p2 = scmp.lt.s32.totalorder %s647_s30, %s641_s29 }
  0x43   : > { %480 = vmatprep.subr.mxu0 %v237_v3  ;;  %p644_p12 = pneg %p643_p8 }
  0x44   : > { %481 = vmatpush3.msra.mxu0 %v237_v3  ;;  %p650_p3 = por %p649_p2, %p648_p0 }
  0x45   : > { %482 = vmatprep.subr.mxu0 %v236_v5 }
  0x46   : > { %483 = vmatpush3.msra.mxu0 %v236_v5  ;;  %p651_p5 = pnand %p650_p3, %p644_p12 }
  0x47   : > { %484 = vmatprep.subr.mxu0 %v235_v6 }
  0x48   : > { %485 = vmatpush3.msra.mxu0 %v235_v6 }
  0x49   : > { %486 = vmatprep.subr.mxu0 %v234_v7 }
  0x4a   : > { %487 = vmatpush3.msra.mxu0 %v234_v7 }
  0x4b   : > { %488 = vmatprep.subr.mxu0 %v233_v8 }
  0x4c   : > { %489 = vmatpush3.msra.mxu0 %v233_v8 }
  0x4d   : > { %490 = vmatprep.subr.mxu0 %v232_v9 }
  0x4e   : > { %491 = vmatpush3.msra.mxu0 %v232_v9 }
  0x4f   : > { %492 = vmatprep.subr.mxu0 %v231_v10 }
  0x50   : > { %493 = vmatpush3.msra.mxu0 %v231_v10 }
  0x51   : > { %494 = vmatprep.subr.mxu0 %v230_v11 }
  0x52   : > { %495 = vmatpush3.msra.mxu0 %v230_v11 }
  0x53   : > { %496 = vmatprep.subr.mxu0 %v229_v12 }
  0x54   : > { %497 = vmatpush3.msra.mxu0 %v229_v12 }
  0x55   : > { %498 = vmatprep.subr.mxu0 %v228_v13 }
  0x56   : > { %499 = vmatpush3.msra.mxu0 %v228_v13 }
  0x57   : > { %500 = vmatprep.subr.mxu0 %v227_v14 }
  0x58   : > { %501 = vmatpush3.msra.mxu0 %v227_v14 }
  0x59   : > { %502 = vmatprep.subr.mxu0 %v226_v15 }
  0x5a   : > { %503 = vmatpush3.msra.mxu0 %v226_v15 }
  0x5b   : > { %504 = vmatprep.subr.mxu0 %v225_v16 }
  0x5c   : > { %505 = vmatpush3.msra.mxu0 %v225_v16 }
  0x5d   : > { %507 = vmatmul.mubr.f32.vlgmr.msra.gmra.mxu0 %v224_v17 }
 0x11d   : > { %v508_v18 = vpop.f32.mrf.mxu0 }
 0x11e   : > { %319 = vst [vmem:[%s211_s19 + $0x8] sm:$0xff] %v508_v18 }
 0x11f   : > { %v307_v19 = vpop.f32.mrf.mxu0 }
 0x120   : > { %318 = vst [vmem:[%s211_s19] sm:$0xff] %v307_v19 }
 0x121   : > { %654 = shalt.err (!%p651_p5)
}
 0x122   : > { %s655_s6 = scalar_lea.hbm %s894_s24, 256  ;;  %s659_s4 = scalar_lea.hbm %s946_s2, 512 }
 0x123   : > { %p656_p7 = scmp.ne.s32.totalorder %s894_s24, %s655_s6  ;;  %p660_p9 = scmp.lt.s32.totalorder %s894_s24, %s946_s2 }
 0x124   : > { %p661_p11 = scmp.lt.s32.totalorder %s659_s4, %s655_s6 }
 0x125   : > { %p657_p4 = pnand %p656_p7, %p839_p13 }
 0x126   : > { %p662_p10 = por %p661_p11, %p660_p9 }
 0x127   : > { %p658_p6 = pneg %p657_p4 }
 0x129   : > { %p663_p1 = pnand %p662_p10, %p658_p6 }
 0x12b   : > { %666 = shalt.err (!%p663_p1)
}
 0x12c   : > { %s732_s22 = smov 128   ;;  %s733_s17 = smov 8  }
 0x12d   : > { %515 = dma.vmem_to_hbm [thread:$0]  (%p839_p13), %s896_s21, 256, %s894_s24, %s321_s26, %s732_s22, %s732_s22, %s733_s17  }
 0x12e PF: > { %s350_s19 = sand.u32 1, %s705_s9   ;;  %p960_p8 = scmp.ne.s32.totalorder %s952_s20, 0 }
 0x12f   : > { %p961_p12 = scmp.ge.s32.totalorder %s725_s14, 2  ;;  %s351_s28 = scalar_lea.sflag [#allocation4], %s350_s19 }
 0x131   : > { %p526_p0 = pnand %p961_p12, %p960_p8 }
 0x133   : > { %p527_p2 = pneg %p526_p0 }
 0x135   : > { %700 = dma.done.wait (%p527_p2), %s351_s28, 256  }
 0x136   : > { %702 = vsyncadd (%p527_p2), %s351_s28, 4294967040  ;;  %s19_s14 = sadd.s32 1, %s725_s14   ;;  %s962_s9 = smov %s709_s10 }
 0x137   : > { %p16_p3 = scmp.ge.s32.totalorder %s19_s14, 4   ;;  %s963_s10 = smov %s713_s11 }
 0x138   : > { %s964_s11 = smov %s848_s15  ;;  %s965_s12 = smov %s721_s13 }
 0x139   : > { %s966_s13 = smov %s968_s25  ;;  %18 = sbr.rel (!%p16_p3) target bundleno = 7 (0x7), region = 82 }
 0x13e   :  { %356 = vsyncpa [#allocation3], 1 }
 0x13f   :  { %358 = vsyncpa [#allocation3 + $0x1], 1 }
 0x140   :  { %359 = vsyncpa [#allocation6], 1 }
 0x141   :  { %360 = vsyncpa [#allocation4], 1 }
 0x142   :  { %362 = vsyncpa [#allocation4 + $0x1], 1 }

</bundles_post_ra>
